<compile_context>
chip_gen: v7x
topology: tpu7x:2x2x1
jax: 0.10.0
libtpu: 0.0.40
codegen_flags: <defaults>
</compile_context>

<pallas_src>
import jax
import jax.numpy as jnp
from jax import lax
from jax.experimental import pallas as pl
from jax.experimental.pallas import tpu as pltpu

_LANES = 128
_ROW_CHUNK = 64            # rows per inner-loop step: 8 vreg-pairs, fits in registers
_MAX_TILE_ROWS = 4096      # (4096, 128) f32 = 2 MiB per input per pipeline buffer
_NUM_CORE_SPLITS = 2       # leading "parallel" axis -> megacore split on multi-TC chips
_PALLAS_MIN_ELEMS = 8192   # below this the fused JAX path wins (also ensures rows >= 64)


def _cdiv(a, b):
    return -(-a // b)


def _make_moments_kernel(num_splits, tile_rows, valid_rows):
    """Builds the streaming raw-moments kernel (closes over static config)."""
    n_chunks = tile_rows // _ROW_CHUNK

    def kernel(pred_ref, label_ref, acc_ref):
        c = pl.program_id(0)
        step = pl.program_id(1)

        @pl.when(step == 0)
        def _init():
            acc_ref[...] = jnp.zeros_like(acc_ref)

        # Intended (unclamped) block this step covers; must match in_map's
        # interleaved assignment.  Used for the ragged-tail mask.
        blk = step * num_splits + c
        start_row = blk * tile_rows

        def run(masked):
            if masked:
                row_iota = lax.broadcasted_iota(jnp.int32, (_ROW_CHUNK, _LANES), 0)

            def body(j, carry):
                sp, sl, spp, sll, spl = carry
                off = pl.multiple_of(j * _ROW_CHUNK, _ROW_CHUNK)
                # Cast inside the kernel: HBM traffic stays at input dtype width.
                p = pred_ref[pl.ds(off, _ROW_CHUNK), :].astype(jnp.float32)
                l = label_ref[pl.ds(off, _ROW_CHUNK), :].astype(jnp.float32)
                if masked:
                    # Zero everything past the true row count BEFORE forming
                    # the products, so garbage rows contribute exactly zero.
                    keep = row_iota < (valid_rows - start_row - off)
                    p = jnp.where(keep, p, 0.0)
                    l = jnp.where(keep, l, 0.0)
                # (64,128) -> (8,8,128): layout-preserving; sum(axis=0) is pure
                # vreg adds (VALU), no cross-lane XLU work in the steady state.
                p3 = p.reshape(_ROW_CHUNK // 8, 8, _LANES)
                l3 = l.reshape(_ROW_CHUNK // 8, 8, _LANES)
                return (sp + jnp.sum(p3, axis=0),
                        sl + jnp.sum(l3, axis=0),
                        spp + jnp.sum(p3 * p3, axis=0),
                        sll + jnp.sum(l3 * l3, axis=0),
                        spl + jnp.sum(p3 * l3, axis=0))

            z = jnp.zeros((8, _LANES), jnp.float32)
            sp, sl, spp, sll, spl = lax.fori_loop(0, n_chunks, body, (z, z, z, z, z))
            # Five (8,128) read-modify-writes per *grid step* (not per vreg).
            acc_ref[0] += sp
            acc_ref[1] += sl
            acc_ref[2] += spp
            acc_ref[3] += sll
            acc_ref[4] += spl

        full = start_row + tile_rows <= valid_rows

        @pl.when(full)
        def _steady():
            run(masked=False)

        @pl.when(jnp.logical_not(full))
        def _tail():
            run(masked=True)

    return kernel


def _ccc_from_moments(s_p, s_l, s_pp, s_ll, s_pl, n):
    """Scalar CCC math from raw moments (tiny; XLA fuses it)."""
    n_f = jnp.float32(n)
    inv_n = 1.0 / n_f
    inv_nm1 = 1.0 / (n_f - 1.0)
    mean_p = s_p * inv_n
    mean_l = s_l * inv_n
    var_p = (s_pp - n_f * mean_p * mean_p) * inv_nm1
    var_l = (s_ll - n_f * mean_l * mean_l) * inv_nm1
    cov = (s_pl - n_f * mean_p * mean_l) * inv_nm1
    d = mean_p - mean_l
    ccc = (2.0 * cov) / (var_p + var_l + d * d + 1e-6)
    return (1.0 - ccc).astype(jnp.float32)


def _ccc_loss_pallas(p, l, n):
    """p, l: flat (n,) arrays (original dtype). Returns scalar f32 loss."""
    rows = _cdiv(n, _LANES)
    padded = rows * _LANES
    if padded != n:
        # Lane-granule pad only (< 128 zeros); zeros leave all five raw-moment
        # sums unchanged.  The previous block-granule jnp.pad is gone.
        # TODO(synk): a manual-DMA (pl.ANY) tail path could stream the unaligned
        # remainder without this host-side copy.
        p = jnp.pad(p, (0, padded - n))
        l = jnp.pad(l, (0, padded - n))
    # Free, layout-preserving reshape to a lane-dense (rows, 128) view.
    p2 = p.reshape(rows, _LANES)
    l2 = l.reshape(rows, _LANES)

    tile_rows = min(_MAX_TILE_ROWS, (rows // _ROW_CHUNK) * _ROW_CHUNK)
    n_blocks = _cdiv(rows, tile_rows)

    # 2-way split of the block list (engages megacore on multi-TC chips).  Skip
    # it when the (<=1) clamped duplicate block would be a noticeable fraction
    # of the work on single-TC chips.
    if n_blocks >= _NUM_CORE_SPLITS and (n_blocks % _NUM_CORE_SPLITS == 0 or n_blocks >= 8):
        num_splits = _NUM_CORE_SPLITS
    else:
        num_splits = 1
    tiles_per_core = _cdiv(n_blocks, num_splits)
    last_blk = n_blocks - 1

    def in_map(c, i):
        # Interleaved block assignment; the (<=1) overhang block is clamped to
        # the last (partial -> cheapest DMA) real block and its contribution is
        # masked to zero inside the kernel.
        return (jnp.minimum(i * num_splits + c, last_blk), 0)

    kernel = _make_moments_kernel(num_splits, tile_rows, rows)

    moments = pl.pallas_call(
        kernel,
        out_shape=jax.ShapeDtypeStruct((num_splits, 5, 8, _LANES), jnp.float32),
        grid_spec=pltpu.PrefetchScalarGridSpec(
            num_scalar_prefetch=0,
            grid=(num_splits, tiles_per_core),
            in_specs=[pl.BlockSpec((tile_rows, _LANES), in_map),
                      pl.BlockSpec((tile_rows, _LANES), in_map)],
            # Per-core (5,8,128) partial-moment block, resident in VMEM across
            # the inner (reduction) axis, written back once per core.
            out_specs=pl.BlockSpec((None, 5, 8, _LANES), lambda c, i: (c, 0, 0, 0)),
        ),
        compiler_params=pltpu.CompilerParams(
            dimension_semantics=("parallel", "arbitrary"),
            vmem_limit_bytes=32 * 1024 * 1024),
    )(p2, l2)

    # Tiny fused epilogue: reduce the per-core/per-lane partial moments to five
    # scalars and finish the CCC math with the TRUE n (not the padded n).
    m = jnp.sum(moments, axis=(0, 2, 3))
    return _ccc_from_moments(m[0], m[1], m[2], m[3], m[4], n)


def _ccc_loss_ref(pred, label):
    """Pure-JAX reference mirroring the PyTorch module (float32 math)."""
    p = jnp.ravel(pred).astype(jnp.float32)
    l = jnp.ravel(label).astype(jnp.float32)
    n = p.shape[0]
    mp, ml = jnp.mean(p), jnp.mean(l)
    vp = jnp.sum((p - mp) ** 2) / (n - 1)
    vl = jnp.sum((l - ml) ** 2) / (n - 1)
    cov = jnp.sum((p - mp) * (l - ml)) / (n - 1)
    ccc = 2.0 * cov / (vp + vl + (mp - ml) ** 2 + 1e-6)
    return (1.0 - ccc).astype(jnp.float32)


def ccc_loss1(pred, label):
    """CCC loss. pred/label: (N,1) or (N,) arrays, any float dtype -> scalar f32."""
    p = jnp.ravel(pred)   # squeeze + .t() of an (N,1)/(N,) tensor == flat (N,)
    l = jnp.ravel(label)
    n = p.shape[0]
    if n < _PALLAS_MIN_ELEMS:
        # Launch/grid overhead dwarfs the work at small N; XLA fuses this path.
        return _ccc_loss_ref(p, l)
    return _ccc_loss_pallas(p, l, n)


if __name__ == "__main__":
    key = jax.random.PRNGKey(0)
    ks = jax.random.split(key, 10)

    def check(pred, label, rtol, atol):
        out = jax.block_until_ready(ccc_loss1(pred, label))
        ref = jax.block_until_ready(_ccc_loss_ref(pred, label))
        assert jnp.allclose(out, ref, rtol=rtol, atol=atol), (out, ref)

    # 1) Small regression batch (the documented (N,1) use case) -> fused JAX path.
    pred = jax.random.normal(ks[0], (16, 1), jnp.float32)
    label = 0.8 * pred + 0.1 * jax.random.normal(ks[1], (16, 1), jnp.float32)
    check(pred, label, 1e-5, 1e-5)

    # 2) f32, N multiple of 128 (no pad at all), 2 blocks / 2-way split,
    #    in-kernel masked tail block.
    pred = jax.random.normal(ks[2], (51_200, 1), jnp.float32)
    label = 0.7 * pred + 0.3 * jax.random.normal(ks[3], (51_200, 1), jnp.float32)
    check(pred, label, 1e-3, 5e-4)

    # 3) bf16, unaligned N (lane-granule pad only) + in-kernel f32 cast.
    p32 = jax.random.normal(ks[4], (300_000, 1), jnp.float32)
    l32 = 0.6 * p32 + 0.4 * jax.random.normal(ks[5], (300_000, 1), jnp.float32)
    check(p32.astype(jnp.bfloat16), l32.astype(jnp.bfloat16), 1e-3, 5e-4)

    # 4) f32, 3 blocks on a single split -> multi-step accumulation along the
    #    inner ("arbitrary") axis + a 1-row masked tail.
    pred = jax.random.normal(ks[6], (1_048_653, 1), jnp.float32)
    label = 0.5 * pred + 0.5 * jax.random.normal(ks[7], (1_048_653, 1), jnp.float32)
    check(pred, label, 2e-3, 1e-3)

    # 5) bf16, 9 blocks / 2-way split -> exercises interleaved block assignment
    #    and the clamped+masked overhang block.
    p32 = jax.random.normal(ks[8], (4_705_792,), jnp.float32)
    l32 = 0.5 * p32 + 0.5 * jax.random.normal(ks[9], (4_705_792,), jnp.float32)
    check(p32.astype(jnp.bfloat16), l32.astype(jnp.bfloat16), 2e-3, 1e-3)

    print("KERNEL_OK")
</pallas_src>

<mosaic_0001>
module attributes {stable_mosaic.version = 11 : i64} {
  func.func @kernel(%arg0: i32, %arg1: i32, %arg2: memref<384x128xf32, #tpu.memory_space<vmem>>, %arg3: memref<384x128xf32, #tpu.memory_space<vmem>>, %arg4: memref<1x5x8x128xf32, #tpu.memory_space<vmem>>) attributes {dimension_semantics = [#tpu.dimension_semantics<parallel>, #tpu.dimension_semantics<arbitrary>], iteration_bounds = array<i64: 2, 1>, scalar_prefetch = 0 : i64, scratch_operands = 0 : i64, tpu.core_type = #tpu.core_type<tc>, window_params = [{transform_indices = @transform_0, window_bounds = array<i64: 384, 128>}, {transform_indices = @transform_1, window_bounds = array<i64: 384, 128>}, {transform_indices = @transform_2, window_bounds = array<i64: 1, 5, 8, 128>}]} {
    %c0_i32 = arith.constant 0 : i32
    %0 = arith.cmpi eq, %arg1, %c0_i32 : i32
    %1 = arith.extui %0 : i1 to i32
    %c0_i32_0 = arith.constant 0 : i32
    %2 = arith.cmpi ne, %1, %c0_i32_0 : i32
    scf.if %2 {
      %cst = arith.constant 0.000000e+00 : f32
      %13 = vector.broadcast %cst : f32 to vector<5x8x128xf32>
      %c0 = arith.constant 0 : index
      %c0_4 = arith.constant 0 : index
      %c0_5 = arith.constant 0 : index
      %c0_6 = arith.constant 0 : index
      %14 = vector.load %arg4[%c0, %c0_4, %c0_5, %c0_6] : memref<1x5x8x128xf32, #tpu.memory_space<vmem>>, vector<1x5x8x128xf32>
      %15 = vector.shape_cast %14 : vector<1x5x8x128xf32> to vector<5x8x128xf32>
      %16 = vector.shape_cast %13 : vector<5x8x128xf32> to vector<1x5x8x128xf32>
      tpu.vector_store %arg4[%c0, %c0_4, %c0_5, %c0_6], %16 {strides = array<i32>} : memref<1x5x8x128xf32, #tpu.memory_space<vmem>>, vector<1x5x8x128xf32>,
    } else {
    }
    %c2_i32 = arith.constant 2 : i32
    %3 = arith.muli %arg1, %c2_i32 : i32
    %4 = arith.addi %3, %arg0 : i32
    %c384_i32 = arith.constant 384 : i32
    %5 = arith.muli %4, %c384_i32 : i32
    %c384_i32_1 = arith.constant 384 : i32
    %6 = arith.addi %5, %c384_i32_1 : i32
    %c400_i32 = arith.constant 400 : i32
    %7 = arith.cmpi sle, %6, %c400_i32 : i32
    %8 = arith.extui %7 : i1 to i32
    %c0_i32_2 = arith.constant 0 : i32
    %9 = arith.cmpi ne, %8, %c0_i32_2 : i32
    scf.if %9 {
      %cst = arith.constant 0.000000e+00 : f32
      %13 = vector.broadcast %cst : f32 to vector<8x128xf32>
      %c0_i32_4 = arith.constant 0 : i32
      %c6_i32 = arith.constant 6 : i32
      %14 = arith.addi %c0_i32_4, %c6_i32 : i32
      %c1_i32 = arith.constant 1 : i32
      %15:5 = scf.for %arg5 = %c0_i32_4 to %14 step %c1_i32 iter_args(%arg6 = %13, %arg7 = %13, %arg8 = %13, %arg9 = %13, %arg10 = %13) -> (vector<8x128xf32>, vector<8x128xf32>, vector<8x128xf32>, vector<8x128xf32>, vector<8x128xf32>)  : i32 {
        %c64_i32 = arith.constant 64 : i32
        %46 = arith.muli %arg5, %c64_i32 : i32
        %47 = tpu.assume_multiple %46, 64 : i32
        %48 = arith.index_cast %47 : i32 to index
        %c0_41 = arith.constant 0 : index
        %49 = vector.load %arg2[%48, %c0_41] : memref<384x128xf32, #tpu.memory_space<vmem>>, vector<64x128xf32>
        %50 = arith.index_cast %47 : i32 to index
        %c0_42 = arith.constant 0 : index
        %51 = vector.load %arg3[%50, %c0_42] : memref<384x128xf32, #tpu.memory_space<vmem>>, vector<64x128xf32>
        %52 = vector.shape_cast %49 : vector<64x128xf32> to vector<8x8x128xf32>
        %53 = vector.shape_cast %51 : vector<64x128xf32> to vector<8x8x128xf32>
        %cst_43 = arith.constant dense<0.000000e+00> : vector<8x128xf32>
        %54 = vector.multi_reduction <add>, %52, %cst_43 [0] : vector<8x8x128xf32> to vector<8x128xf32>
        %55 = arith.addf %arg6, %54 : vector<8x128xf32>
        %cst_44 = arith.constant dense<0.000000e+00> : vector<8x128xf32>
        %56 = vector.multi_reduction <add>, %53, %cst_44 [0] : vector<8x8x128xf32> to vector<8x128xf32>
        %57 = arith.addf %arg7, %56 : vector<8x128xf32>
        %58 = arith.mulf %52, %52 : vector<8x8x128xf32>
        %cst_45 = arith.constant dense<0.000000e+00> : vector<8x128xf32>
        %59 = vector.multi_reduction <add>, %58, %cst_45 [0] : vector<8x8x128xf32> to vector<8x128xf32>
        %60 = arith.addf %arg8, %59 : vector<8x128xf32>
        %61 = arith.mulf %53, %53 : vector<8x8x128xf32>
        %cst_46 = arith.constant dense<0.000000e+00> : vector<8x128xf32>
        %62 = vector.multi_reduction <add>, %61, %cst_46 [0] : vector<8x8x128xf32> to vector<8x128xf32>
        %63 = arith.addf %arg9, %62 : vector<8x128xf32>
        %64 = arith.mulf %52, %53 : vector<8x8x128xf32>
        %cst_47 = arith.constant dense<0.000000e+00> : vector<8x128xf32>
        %65 = vector.multi_reduction <add>, %64, %cst_47 [0] : vector<8x8x128xf32> to vector<8x128xf32>
        %66 = arith.addf %arg10, %65 : vector<8x128xf32>
        scf.yield %55, %57, %60, %63, %66 : vector<8x128xf32>, vector<8x128xf32>, vector<8x128xf32>, vector<8x128xf32>, vector<8x128xf32>
      }
      %c6_i32_5 = arith.constant 6 : i32
      %c0 = arith.constant 0 : index
      %c0_6 = arith.constant 0 : index
      %c0_7 = arith.constant 0 : index
      %c0_8 = arith.constant 0 : index
      %16 = vector.load %arg4[%c0, %c0_6, %c0_7, %c0_8] : memref<1x5x8x128xf32, #tpu.memory_space<vmem>>, vector<1x1x8x128xf32>
      %17 = vector.shape_cast %16 : vector<1x1x8x128xf32> to vector<8x128xf32>
      %18 = arith.addf %17, %15#0 : vector<8x128xf32>
      %c0_9 = arith.constant 0 : index
      %c0_10 = arith.constant 0 : index
      %c0_11 = arith.constant 0 : index
      %c0_12 = arith.constant 0 : index
      %19 = vector.load %arg4[%c0_9, %c0_10, %c0_11, %c0_12] : memref<1x5x8x128xf32, #tpu.memory_space<vmem>>, vector<1x1x8x128xf32>
      %20 = vector.shape_cast %19 : vector<1x1x8x128xf32> to vector<8x128xf32>
      %21 = vector.shape_cast %18 : vector<8x128xf32> to vector<1x1x8x128xf32>
      tpu.vector_store %arg4[%c0_9, %c0_10, %c0_11, %c0_12], %21 {strides = array<i32>} : memref<1x5x8x128xf32, #tpu.memory_space<vmem>>, vector<1x1x8x128xf32>,
      %c0_13 = arith.constant 0 : index
      %c1 = arith.constant 1 : index
      %c0_14 = arith.constant 0 : index
      %c0_15 = arith.constant 0 : index
      %22 = vector.load %arg4[%c0_13, %c1, %c0_14, %c0_15] : memref<1x5x8x128xf32, #tpu.memory_space<vmem>>, vector<1x1x8x128xf32>
      %23 = vector.shape_cast %22 : vector<1x1x8x128xf32> to vector<8x128xf32>
      %24 = arith.addf %23, %15#1 : vector<8x128xf32>
      %c0_16 = arith.constant 0 : index
      %c1_17 = arith.constant 1 : index
      %c0_18 = arith.constant 0 : index
      %c0_19 = arith.constant 0 : index
      %25 = vector.load %arg4[%c0_16, %c1_17, %c0_18, %c0_19] : memref<1x5x8x128xf32, #tpu.memory_space<vmem>>, vector<1x1x8x128xf32>
      %26 = vector.shape_cast %25 : vector<1x1x8x128xf32> to vector<8x128xf32>
      %27 = vector.shape_cast %24 : vector<8x128xf32> to vector<1x1x8x128xf32>
      tpu.vector_store %arg4[%c0_16, %c1_17, %c0_18, %c0_19], %27 {strides = array<i32>} : memref<1x5x8x128xf32, #tpu.memory_space<vmem>>, vector<1x1x8x128xf32>,
      %c0_20 = arith.constant 0 : index
      %c2 = arith.constant 2 : index
      %c0_21 = arith.constant 0 : index
      %c0_22 = arith.constant 0 : index
      %28 = vector.load %arg4[%c0_20, %c2, %c0_21, %c0_22] : memref<1x5x8x128xf32, #tpu.memory_space<vmem>>, vector<1x1x8x128xf32>
      %29 = vector.shape_cast %28 : vector<1x1x8x128xf32> to vector<8x128xf32>
      %30 = arith.addf %29, %15#2 : vector<8x128xf32>
      %c0_23 = arith.constant 0 : index
      %c2_24 = arith.constant 2 : index
      %c0_25 = arith.constant 0 : index
      %c0_26 = arith.constant 0 : index
      %31 = vector.load %arg4[%c0_23, %c2_24, %c0_25, %c0_26] : memref<1x5x8x128xf32, #tpu.memory_space<vmem>>, vector<1x1x8x128xf32>
      %32 = vector.shape_cast %31 : vector<1x1x8x128xf32> to vector<8x128xf32>
      %33 = vector.shape_cast %30 : vector<8x128xf32> to vector<1x1x8x128xf32>
      tpu.vector_store %arg4[%c0_23, %c2_24, %c0_25, %c0_26], %33 {strides = array<i32>} : memref<1x5x8x128xf32, #tpu.memory_space<vmem>>, vector<1x1x8x128xf32>,
      %c0_27 = arith.constant 0 : index
      %c3 = arith.constant 3 : index
      %c0_28 = arith.constant 0 : index
      %c0_29 = arith.constant 0 : index
      %34 = vector.load %arg4[%c0_27, %c3, %c0_28, %c0_29] : memref<1x5x8x128xf32, #tpu.memory_space<vmem>>, vector<1x1x8x128xf32>
      %35 = vector.shape_cast %34 : vector<1x1x8x128xf32> to vector<8x128xf32>
      %36 = arith.addf %35, %15#3 : vector<8x128xf32>
      %c0_30 = arith.constant 0 : index
      %c3_31 = arith.constant 3 : index
      %c0_32 = arith.constant 0 : index
      %c0_33 = arith.constant 0 : index
      %37 = vector.load %arg4[%c0_30, %c3_31, %c0_32, %c0_33] : memref<1x5x8x128xf32, #tpu.memory_space<vmem>>, vector<1x1x8x128xf32>
      %38 = vector.shape_cast %37 : vector<1x1x8x128xf32> to vector<8x128xf32>
      %39 = vector.shape_cast %36 : vector<8x128xf32> to vector<1x1x8x128xf32>
      tpu.vector_store %arg4[%c0_30, %c3_31, %c0_32, %c0_33], %39 {strides = array<i32>} : memref<1x5x8x128xf32, #tpu.memory_space<vmem>>, vector<1x1x8x128xf32>,
      %c0_34 = arith.constant 0 : index
      %c4 = arith.constant 4 : index
      %c0_35 = arith.constant 0 : index
      %c0_36 = arith.constant 0 : index
      %40 = vector.load %arg4[%c0_34, %c4, %c0_35, %c0_36] : memref<1x5x8x128xf32, #tpu.memory_space<vmem>>, vector<1x1x8x128xf32>
      %41 = vector.shape_cast %40 : vector<1x1x8x128xf32> to vector<8x128xf32>
      %42 = arith.addf %41, %15#4 : vector<8x128xf32>
      %c0_37 = arith.constant 0 : index
      %c4_38 = arith.constant 4 : index
      %c0_39 = arith.constant 0 : index
      %c0_40 = arith.constant 0 : index
      %43 = vector.load %arg4[%c0_37, %c4_38, %c0_39, %c0_40] : memref<1x5x8x128xf32, #tpu.memory_space<vmem>>, vector<1x1x8x128xf32>
      %44 = vector.shape_cast %43 : vector<1x1x8x128xf32> to vector<8x128xf32>
      %45 = vector.shape_cast %42 : vector<8x128xf32> to vector<1x1x8x128xf32>
      tpu.vector_store %arg4[%c0_37, %c4_38, %c0_39, %c0_40], %45 {strides = array<i32>} : memref<1x5x8x128xf32, #tpu.memory_space<vmem>>, vector<1x1x8x128xf32>,
    } else {
    }
    %true = arith.constant true
    %10 = arith.xori %7, %true : i1
    %11 = arith.extui %10 : i1 to i32
    %c0_i32_3 = arith.constant 0 : i32
    %12 = arith.cmpi ne, %11, %c0_i32_3 : i32
    scf.if %12 {
      %13 = tpu.iota {dimensions = array<i32: 0>} : vector<64x128xi32>
      %cst = arith.constant 0.000000e+00 : f32
      %14 = vector.broadcast %cst : f32 to vector<8x128xf32>
      %c0_i32_4 = arith.constant 0 : i32
      %c6_i32 = arith.constant 6 : i32
      %15 = arith.addi %c0_i32_4, %c6_i32 : i32
      %c1_i32 = arith.constant 1 : i32
      %16:5 = scf.for %arg5 = %c0_i32_4 to %15 step %c1_i32 iter_args(%arg6 = %14, %arg7 = %14, %arg8 = %14, %arg9 = %14, %arg10 = %14) -> (vector<8x128xf32>, vector<8x128xf32>, vector<8x128xf32>, vector<8x128xf32>, vector<8x128xf32>)  : i32 {
        %c64_i32 = arith.constant 64 : i32
        %47 = arith.muli %arg5, %c64_i32 : i32
        %48 = tpu.assume_multiple %47, 64 : i32
        %49 = arith.index_cast %48 : i32 to index
        %c0_41 = arith.constant 0 : index
        %50 = vector.load %arg2[%49, %c0_41] : memref<384x128xf32, #tpu.memory_space<vmem>>, vector<64x128xf32>
        %51 = arith.index_cast %48 : i32 to index
        %c0_42 = arith.constant 0 : index
        %52 = vector.load %arg3[%51, %c0_42] : memref<384x128xf32, #tpu.memory_space<vmem>>, vector<64x128xf32>
        %c400_i32_43 = arith.constant 400 : i32
        %53 = arith.subi %c400_i32_43, %5 : i32
        %54 = arith.subi %53, %48 : i32
        %55 = vector.broadcast %54 : i32 to vector<64x128xi32>
        %56 = arith.cmpi slt, %13, %55 : vector<64x128xi32>
        %cst_44 = arith.constant 0.000000e+00 : f32
        %57 = vector.broadcast %cst_44 : f32 to vector<64x128xf32>
        %58 = arith.select %56, %50, %57 : vector<64x128xi1>, vector<64x128xf32>
        %cst_45 = arith.constant 0.000000e+00 : f32
        %59 = vector.broadcast %cst_45 : f32 to vector<64x128xf32>
        %60 = arith.select %56, %52, %59 : vector<64x128xi1>, vector<64x128xf32>
        %61 = vector.shape_cast %58 : vector<64x128xf32> to vector<8x8x128xf32>
        %62 = vector.shape_cast %60 : vector<64x128xf32> to vector<8x8x128xf32>
        %cst_46 = arith.constant dense<0.000000e+00> : vector<8x128xf32>
        %63 = vector.multi_reduction <add>, %61, %cst_46 [0] : vector<8x8x128xf32> to vector<8x128xf32>
        %64 = arith.addf %arg6, %63 : vector<8x128xf32>
        %cst_47 = arith.constant dense<0.000000e+00> : vector<8x128xf32>
        %65 = vector.multi_reduction <add>, %62, %cst_47 [0] : vector<8x8x128xf32> to vector<8x128xf32>
        %66 = arith.addf %arg7, %65 : vector<8x128xf32>
        %67 = arith.mulf %61, %61 : vector<8x8x128xf32>
        %cst_48 = arith.constant dense<0.000000e+00> : vector<8x128xf32>
        %68 = vector.multi_reduction <add>, %67, %cst_48 [0] : vector<8x8x128xf32> to vector<8x128xf32>
        %69 = arith.addf %arg8, %68 : vector<8x128xf32>
        %70 = arith.mulf %62, %62 : vector<8x8x128xf32>
        %cst_49 = arith.constant dense<0.000000e+00> : vector<8x128xf32>
        %71 = vector.multi_reduction <add>, %70, %cst_49 [0] : vector<8x8x128xf32> to vector<8x128xf32>
        %72 = arith.addf %arg9, %71 : vector<8x128xf32>
        %73 = arith.mulf %61, %62 : vector<8x8x128xf32>
        %cst_50 = arith.constant dense<0.000000e+00> : vector<8x128xf32>
        %74 = vector.multi_reduction <add>, %73, %cst_50 [0] : vector<8x8x128xf32> to vector<8x128xf32>
        %75 = arith.addf %arg10, %74 : vector<8x128xf32>
        scf.yield %64, %66, %69, %72, %75 : vector<8x128xf32>, vector<8x128xf32>, vector<8x128xf32>, vector<8x128xf32>, vector<8x128xf32>
      }
      %c6_i32_5 = arith.constant 6 : i32
      %c0 = arith.constant 0 : index
      %c0_6 = arith.constant 0 : index
      %c0_7 = arith.constant 0 : index
      %c0_8 = arith.constant 0 : index
      %17 = vector.load %arg4[%c0, %c0_6, %c0_7, %c0_8] : memref<1x5x8x128xf32, #tpu.memory_space<vmem>>, vector<1x1x8x128xf32>
      %18 = vector.shape_cast %17 : vector<1x1x8x128xf32> to vector<8x128xf32>
      %19 = arith.addf %18, %16#0 : vector<8x128xf32>
      %c0_9 = arith.constant 0 : index
      %c0_10 = arith.constant 0 : index
      %c0_11 = arith.constant 0 : index
      %c0_12 = arith.constant 0 : index
      %20 = vector.load %arg4[%c0_9, %c0_10, %c0_11, %c0_12] : memref<1x5x8x128xf32, #tpu.memory_space<vmem>>, vector<1x1x8x128xf32>
      %21 = vector.shape_cast %20 : vector<1x1x8x128xf32> to vector<8x128xf32>
      %22 = vector.shape_cast %19 : vector<8x128xf32> to vector<1x1x8x128xf32>
      tpu.vector_store %arg4[%c0_9, %c0_10, %c0_11, %c0_12], %22 {strides = array<i32>} : memref<1x5x8x128xf32, #tpu.memory_space<vmem>>, vector<1x1x8x128xf32>,
      %c0_13 = arith.constant 0 : index
      %c1 = arith.constant 1 : index
      %c0_14 = arith.constant 0 : index
      %c0_15 = arith.constant 0 : index
      %23 = vector.load %arg4[%c0_13, %c1, %c0_14, %c0_15] : memref<1x5x8x128xf32, #tpu.memory_space<vmem>>, vector<1x1x8x128xf32>
      %24 = vector.shape_cast %23 : vector<1x1x8x128xf32> to vector<8x128xf32>
      %25 = arith.addf %24, %16#1 : vector<8x128xf32>
      %c0_16 = arith.constant 0 : index
      %c1_17 = arith.constant 1 : index
      %c0_18 = arith.constant 0 : index
      %c0_19 = arith.constant 0 : index
      %26 = vector.load %arg4[%c0_16, %c1_17, %c0_18, %c0_19] : memref<1x5x8x128xf32, #tpu.memory_space<vmem>>, vector<1x1x8x128xf32>
      %27 = vector.shape_cast %26 : vector<1x1x8x128xf32> to vector<8x128xf32>
      %28 = vector.shape_cast %25 : vector<8x128xf32> to vector<1x1x8x128xf32>
      tpu.vector_store %arg4[%c0_16, %c1_17, %c0_18, %c0_19], %28 {strides = array<i32>} : memref<1x5x8x128xf32, #tpu.memory_space<vmem>>, vector<1x1x8x128xf32>,
      %c0_20 = arith.constant 0 : index
      %c2 = arith.constant 2 : index
      %c0_21 = arith.constant 0 : index
      %c0_22 = arith.constant 0 : index
      %29 = vector.load %arg4[%c0_20, %c2, %c0_21, %c0_22] : memref<1x5x8x128xf32, #tpu.memory_space<vmem>>, vector<1x1x8x128xf32>
      %30 = vector.shape_cast %29 : vector<1x1x8x128xf32> to vector<8x128xf32>
      %31 = arith.addf %30, %16#2 : vector<8x128xf32>
      %c0_23 = arith.constant 0 : index
      %c2_24 = arith.constant 2 : index
      %c0_25 = arith.constant 0 : index
      %c0_26 = arith.constant 0 : index
      %32 = vector.load %arg4[%c0_23, %c2_24, %c0_25, %c0_26] : memref<1x5x8x128xf32, #tpu.memory_space<vmem>>, vector<1x1x8x128xf32>
      %33 = vector.shape_cast %32 : vector<1x1x8x128xf32> to vector<8x128xf32>
      %34 = vector.shape_cast %31 : vector<8x128xf32> to vector<1x1x8x128xf32>
      tpu.vector_store %arg4[%c0_23, %c2_24, %c0_25, %c0_26], %34 {strides = array<i32>} : memref<1x5x8x128xf32, #tpu.memory_space<vmem>>, vector<1x1x8x128xf32>,
      %c0_27 = arith.constant 0 : index
      %c3 = arith.constant 3 : index
      %c0_28 = arith.constant 0 : index
      %c0_29 = arith.constant 0 : index
      %35 = vector.load %arg4[%c0_27, %c3, %c0_28, %c0_29] : memref<1x5x8x128xf32, #tpu.memory_space<vmem>>, vector<1x1x8x128xf32>
      %36 = vector.shape_cast %35 : vector<1x1x8x128xf32> to vector<8x128xf32>
      %37 = arith.addf %36, %16#3 : vector<8x128xf32>
      %c0_30 = arith.constant 0 : index
      %c3_31 = arith.constant 3 : index
      %c0_32 = arith.constant 0 : index
      %c0_33 = arith.constant 0 : index
      %38 = vector.load %arg4[%c0_30, %c3_31, %c0_32, %c0_33] : memref<1x5x8x128xf32, #tpu.memory_space<vmem>>, vector<1x1x8x128xf32>
      %39 = vector.shape_cast %38 : vector<1x1x8x128xf32> to vector<8x128xf32>
      %40 = vector.shape_cast %37 : vector<8x128xf32> to vector<1x1x8x128xf32>
      tpu.vector_store %arg4[%c0_30, %c3_31, %c0_32, %c0_33], %40 {strides = array<i32>} : memref<1x5x8x128xf32, #tpu.memory_space<vmem>>, vector<1x1x8x128xf32>,
      %c0_34 = arith.constant 0 : index
      %c4 = arith.constant 4 : index
      %c0_35 = arith.constant 0 : index
      %c0_36 = arith.constant 0 : index
      %41 = vector.load %arg4[%c0_34, %c4, %c0_35, %c0_36] : memref<1x5x8x128xf32, #tpu.memory_space<vmem>>, vector<1x1x8x128xf32>
      %42 = vector.shape_cast %41 : vector<1x1x8x128xf32> to vector<8x128xf32>
      %43 = arith.addf %42, %16#4 : vector<8x128xf32>
      %c0_37 = arith.constant 0 : index
      %c4_38 = arith.constant 4 : index
      %c0_39 = arith.constant 0 : index
      %c0_40 = arith.constant 0 : index
      %44 = vector.load %arg4[%c0_37, %c4_38, %c0_39, %c0_40] : memref<1x5x8x128xf32, #tpu.memory_space<vmem>>, vector<1x1x8x128xf32>
      %45 = vector.shape_cast %44 : vector<1x1x8x128xf32> to vector<8x128xf32>
      %46 = vector.shape_cast %43 : vector<8x128xf32> to vector<1x1x8x128xf32>
      tpu.vector_store %arg4[%c0_37, %c4_38, %c0_39, %c0_40], %46 {strides = array<i32>} : memref<1x5x8x128xf32, #tpu.memory_space<vmem>>, vector<1x1x8x128xf32>,
    } else {
    }
    return
  }
  func.func @transform_0(%arg0: i32, %arg1: i32) -> (i32, i32) {
    %c2_i32 = arith.constant 2 : i32
    %0 = arith.muli %arg1, %c2_i32 : i32
    %1 = arith.addi %0, %arg0 : i32
    %c1_i32 = arith.constant 1 : i32
    %2 = arith.minsi %1, %c1_i32 : i32
    %c0_i32 = arith.constant 0 : i32
    %c0_i32_0 = arith.constant 0 : i32
    return %2, %c0_i32 : i32, i32
  }
  func.func @transform_1(%arg0: i32, %arg1: i32) -> (i32, i32) {
    %c2_i32 = arith.constant 2 : i32
    %0 = arith.muli %arg1, %c2_i32 : i32
    %1 = arith.addi %0, %arg0 : i32
    %c1_i32 = arith.constant 1 : i32
    %2 = arith.minsi %1, %c1_i32 : i32
    %c0_i32 = arith.constant 0 : i32
    %c0_i32_0 = arith.constant 0 : i32
    return %2, %c0_i32 : i32, i32
  }
  func.func @transform_2(%arg0: i32, %arg1: i32) -> (i32, i32, i32, i32) {
    %c0_i32 = arith.constant 0 : i32
    %c0_i32_0 = arith.constant 0 : i32
    %c0_i32_1 = arith.constant 0 : i32
    %c0_i32_2 = arith.constant 0 : i32
    return %arg0, %c0_i32, %c0_i32_0, %c0_i32_1 : i32, i32, i32, i32
  }
}

</mosaic_0001>

<bundles_post_ra>
// kernel: tpu_custom_call.1
= control target key start
LH: loop header
LB: loop body
LE: loop exit
PB: predicated region body
PF: predicated region fallthrough
CT: control target
= control target key end

     0   :  { %7 = vsyncpa [#allocation3], 0  ;;  %s1769_s0 = inlined_call_operand.hbm [shape: f32[400,128], index: 0, kind: input, shape index: {}]   ;;  %s1770_s1 = inlined_call_operand.hbm [shape: f32[400,128], index: 1, kind: input, shape index: {}]   ;;  %s1771_s2 = inlined_call_operand.hbm [shape: f32[2,5,8,128], index: 2, kind: output, shape index: {}]  }
   0x1   :  { %9 = vsyncpa [#allocation3 + $0x1], 0 }
   0x2   :  { %10 = vsyncpa [#allocation6], 0 }
   0x3   :  { %12 = vsyncpa [#allocation6 + $0x1], 0 }
   0x4   :  { %13 = vsyncpa [#allocation4], 0 }
   0x5   :  { %15 = vsyncpa [#allocation4 + $0x1], 0  ;;  %s1235_s9 = smov 0   ;;  %s1237_s10 = smov 0  }
   0x6   :  { %s1239_s11 = smov 0   ;;  %s1241_s12 = smov 0  }
   0x7   :  { %s1243_s13 = smov 0   ;;  %s1245_s14 = smov 0  }
   0x8   :  { %s1247_s15 = smov 0   ;;  %s1249_s16 = smov 0  }
   0x9   :  { %s1251_s17 = smov 0  }
   0xa LB: > { %s717_s18 = sadd.s32 4294967295, %s1160_s17   ;;  %s718_s19 = sadd.s32 4294967294, %s1160_s17   ;;  %s1160_s17 = sphi %s1251_s17, %s21_s17   ;;  %s1156_s16 = sphi %s1249_s16, %s1801_s16   ;;  %s1152_s15 = sphi %s1247_s15, %s1800_s15   ;;  %s1148_s14 = sphi %s1245_s14, %s1799_s14   ;;  %s1144_s13 = sphi %s1243_s13, %s1798_s13   ;;  %s1140_s12 = sphi %s1241_s12, %s1797_s12   ;;  %s1136_s11 = sphi %s1239_s11, %s1796_s11   ;;  %s1132_s10 = sphi %s1237_s10, %s1795_s10   ;;  %s1128_s9 = sphi %s1235_s9, %s1794_s9  }
   0xb   : > { %s33_s20 = sadd.s32 1, %s1156_s16  ;;  %p39_p0 = scmp.lt.s32.totalorder %s1156_s16, 1 }
   0xc   : > { %p35_p1 = scmp.ge.s32.totalorder %s33_s20, 2  ;;  %s48_s21 = sadd.s32 1, %s1148_s14 }
   0xd   : > { %s1284_s22 = scalar_select %p39_p0, %s1156_s16, 1 }
   0xe   : > { %s1803_s20 = smov (%p35_p1, %s33_s20), 0  ;;  %p55_p2 = scmp.ne.s32.totalorder %s1148_s14, %s1144_s13 }
   0xf   : > { %1775 = sst [smem:[#allocation11_spill]] %s1803_s20  ;;  %p56_p3 = scmp.eq.s32.totalorder %s1160_s17, 0 }
  0x10   : > { %p43_p4 = scmp.lt.s32.totalorder %s1803_s20, 1  ;;  %p61_p5 = scmp.ne.s32.totalorder %s1144_s13, %s1140_s12 }
  0x11   : > { %p1293_p6 = por %p56_p3, %p55_p2  ;;  %p62_p7 = scmp.eq.s32.totalorder %s717_s18, 0 }
  0x12   : > { %s44_s24 = scalar_select %p43_p4, %s1803_s20, 1 }
  0x13   : > { %p1298_p8 = por %p62_p7, %p61_p5  ;;  %s105_s26 = ssub.s32 %s1156_s16, %s1803_s20 }
  0x14   : > { %s45_s27 = ssub.s32 %s1284_s22, %s44_s24  ;;  %p106_p9 = scmp.eq.s32.totalorder %s105_s26, 0 }
  0x15   : > { %p46_p10 = scmp.eq.s32.totalorder %s45_s27, 0  ;;  %s108_s28 = sadd.s32 1, %s1136_s11 }
  0x16   : > { %s1307_s29 = scalar_select %p106_p9, %s1136_s11, %s108_s28  }
  0x17   : > { %s1310_s30 = scalar_select %p46_p10, %s1148_s14, %s48_s21  }
  0x18   : > { %p118_p11 = scmp.ne.s32.totalorder %s1136_s11, %s1132_s10  ;;  %p119_p12 = scmp.eq.s32.totalorder %s717_s18, 1 }
  0x19   : > { %p124_p13 = scmp.ne.s32.totalorder %s1132_s10, %s1128_s9  ;;  %p125_p0 = scmp.eq.s32.totalorder %s718_s19, 1 }
  0x1a   : > { %p1316_p1 = por %p119_p12, %p118_p11  ;;  %p1773_p3 = scmp.ge.s32.totalorder %s1160_s17, 2 }
  0x1b   : > { %p1320_p2 = por %p125_p0, %p124_p13 }
  0x1c   : > { %s1778_s3 = scalar_select %p1316_p1, 1, 0 }
  0x1d   : > { %s1779_s4 = scalar_select %p1320_p2, 1, 0 }
  0x1e   : > { %141 = sbr.rel (%p1773_p3) target bundleno = 107 (0x6b), region = 16 }
  0x25   : > { %144 = sbr.rel (!%p1293_p6) target bundleno = 72 (0x48), region = 20  ;;  %s145_s5 = sand.u32 (%p1293_p6), 1, %s1148_s14  }
  0x26   : > { %s154_s6 = smul.u32 (%p1293_p6), 48, %s1284_s22  ;;  %s1334_s19 = scalar_lea.sflag (%p1293_p6), [#allocation3], %s145_s5 }
  0x27   : > { %s757_s7 = smul.u32 (%p1293_p6), 384, %s145_s5 }
  0x28   : > { %s155_s8 = ssub.s32 (%p1293_p6), 50, %s154_s6 }
  0x29   : > { %p156_p4 = scmp.lt.s32.totalorder (%p1293_p6), %s155_s8, 48  ;;  %s149_s21 = scalar_lea.vmem (%p1293_p6), [#allocation2], %s757_s7 }
  0x2c   : > { %s1805_s8 = smov (!%p156_p4, %s155_s8), 48 }
  0x2d   : > { %s1331_s12 = sshll.u32 %s1805_s8, 7 }
  0x2e   : > { %s160_s18 = ssub.s32 6144, %s1331_s12 }
  0x2f   : > { %161 = vsyncadd %s1334_s19, %s160_s18  ;;  %p722_p5 = scmp.ne.s32.totalorder %s1331_s12, 0  ;;  %s755_s24 = smul.u32 6144, %s1284_s22 }
  0x30   : > { %s166_s26 = sshll.u32 %s149_s21, 4  ;;  %s950_s18 = scalar_lea.hbm %s1769_s0, 6400  ;;  %s1344_s26 = int_to_ptr.vmem [resolvable:$true] %s166_s26 }
  0x31   : > { %s1342_s6 = scalar_lea.hbm %s1769_s0, %s755_s24 }
  0x32   : > { %s946_s5 = scalar_lea.hbm %s1342_s6, %s1331_s12  ;;  %p951_p11 = scmp.lt.u32.totalorder %s1342_s6, %s1769_s0 }
  0x33   : > { %p947_p7 = scmp.ne.s32.totalorder %s1342_s6, %s946_s5  ;;  %p952_p12 = scmp.lt.u32.totalorder %s950_s18, %s946_s5 }
  0x34   : > { %p954_p0 = scmp.lt.u32.totalorder %s946_s5, %s1342_s6 }
  0x35   : > { %p948_p9 = pnand %p947_p7, %p722_p5  ;;  %p953_p13 = por %p952_p12, %p951_p11 }
  0x37   : > { %p949_p10 = pneg %p948_p9  ;;  %p955_p4 = por %p954_p0, %p953_p13 }
  0x39   : > { %p956_p3 = pnand %p955_p4, %p949_p10 }
  0x3b   : > { %959 = shalt.err (!%p956_p3)
}
  0x3c   : > { %s960_s24 = scalar_lea.vmem %s1344_s26, %s1331_s12  ;;  %s1210_s27 = smov [#allocation2]  }
  0x3d   : > { %p961_p7 = scmp.ne.s32.totalorder %s1344_s26, %s960_s24  ;;  %s964_s28 = sshll.u32 %s1210_s27, 4  ;;  %s965_s28 = int_to_ptr.vmem [resolvable:$false] %s964_s28 }
  0x3e   : > { %s966_s20 = scalar_lea.vmem %s965_s28, 12288  ;;  %p967_p1 = scmp.lt.s32.totalorder %s1344_s26, %s965_s28 }
  0x3f   : > { %p962_p9 = pnand %p961_p7, %p722_p5  ;;  %p968_p11 = scmp.lt.s32.totalorder %s966_s20, %s960_s24 }
  0x41   : > { %p963_p2 = pneg %p962_p9  ;;  %p969_p12 = por %p968_p11, %p967_p1 }
  0x43   : > { %p970_p13 = pnand %p969_p12, %p963_p2 }
  0x45   : > { %973 = shalt.err (!%p970_p13)
}
  0x46   : > { %s1211_s5 = smov 128   ;;  %s1212_s7 = smov 8  }
  0x47   : > { %172 = dma.hbm_to_vmem [thread:$0]  (%p722_p5), %s1342_s6, %s1331_s12, %s1344_s26, %s1334_s19, %s1211_s5, %s1211_s5, %s1212_s7  }
  0x48 PF: > { %175 = sbr.rel (!%p1293_p6) target bundleno = 107 (0x6b), region = 24  ;;  %s176_s8 = sand.u32 (%p1293_p6), 1, %s1148_s14  }
  0x49   : > { %s185_s18 = smul.u32 (%p1293_p6), 48, %s1284_s22  ;;  %s1378_s20 = scalar_lea.sflag (%p1293_p6), [#allocation6], %s176_s8 }
  0x4a   : > { %s758_s21 = smul.u32 (%p1293_p6), 384, %s176_s8 }
  0x4b   : > { %s186_s24 = ssub.s32 (%p1293_p6), 50, %s185_s18 }
  0x4c   : > { %p187_p1 = scmp.lt.s32.totalorder (%p1293_p6), %s186_s24, 48  ;;  %s180_s12 = scalar_lea.vmem (%p1293_p6), [#allocation5], %s758_s21 }
  0x4f   : > { %s1807_s24 = smov (!%p187_p1, %s186_s24), 48 }
  0x50   : > { %s1375_s27 = sshll.u32 %s1807_s24, 7 }
  0x51   : > { %s191_s28 = ssub.s32 6144, %s1375_s27 }
  0x52   : > { %192 = vsyncadd %s1378_s20, %s191_s28  ;;  %p727_p6 = scmp.ne.s32.totalorder %s1375_s27, 0  ;;  %s756_s23 = smul.u32 6144, %s1284_s22 }
  0x53   : > { %s197_s19 = sshll.u32 %s180_s12, 4  ;;  %s978_s22 = scalar_lea.hbm %s1770_s1, 6400  ;;  %s1388_s19 = int_to_ptr.vmem [resolvable:$true] %s197_s19 }
  0x54   : > { %s1386_s5 = scalar_lea.hbm %s1770_s1, %s756_s23 }
  0x55   : > { %s974_s7 = scalar_lea.hbm %s1386_s5, %s1375_s27  ;;  %p979_p10 = scmp.lt.u32.totalorder %s1386_s5, %s1770_s1 }
  0x56   : > { %p975_p2 = scmp.ne.s32.totalorder %s1386_s5, %s974_s7  ;;  %p980_p0 = scmp.lt.u32.totalorder %s978_s22, %s974_s7 }
  0x57   : > { %p982_p7 = scmp.lt.u32.totalorder %s974_s7, %s1386_s5 }
  0x58   : > { %p976_p3 = pnand %p975_p2, %p727_p6  ;;  %p981_p4 = por %p980_p0, %p979_p10 }
  0x5a   : > { %p977_p5 = pneg %p976_p3  ;;  %p983_p9 = por %p982_p7, %p981_p4 }
  0x5c   : > { %p984_p11 = pnand %p983_p9, %p977_p5 }
  0x5e   : > { %987 = shalt.err (!%p984_p11)
}
  0x5f   : > { %s988_s28 = scalar_lea.vmem %s1388_s19, %s1375_s27  ;;  %s1213_s12 = smov [#allocation5]  }
  0x60   : > { %p989_p12 = scmp.ne.s32.totalorder %s1388_s19, %s988_s28  ;;  %s992_s23 = sshll.u32 %s1213_s12, 4  ;;  %s993_s23 = int_to_ptr.vmem [resolvable:$false] %s992_s23 }
  0x61   : > { %s994_s26 = scalar_lea.vmem %s993_s23, 12288  ;;  %p995_p2 = scmp.lt.s32.totalorder %s1388_s19, %s993_s23 }
  0x62   : > { %p990_p13 = pnand %p989_p12, %p727_p6  ;;  %p996_p3 = scmp.lt.s32.totalorder %s994_s26, %s988_s28 }
  0x64   : > { %p991_p1 = pneg %p990_p13  ;;  %p997_p10 = por %p996_p3, %p995_p2 }
  0x66   : > { %p998_p0 = pnand %p997_p10, %p991_p1 }
  0x68   : > { %1001 = shalt.err (!%p998_p0)
}
  0x69   : > { %s1214_s6 = smov 128   ;;  %s1215_s7 = smov 8  }
  0x6a   : > { %203 = dma.hbm_to_vmem [thread:$0]  (%p727_p6), %s1386_s5, %s1375_s27, %s1388_s19, %s1378_s20, %s1214_s6, %s1214_s6, %s1215_s7  }
  0x6b PF: > { %p731_p5 = scmp.ge.s32.totalorder %s1160_s17, 1  ;;  %p205_p4 = scmp.lt.s32.totalorder %s1160_s17, 3 }
  0x6d   : > { %p206_p7 = pnand %p731_p5, %p205_p4 }
  0x6e   : > { %s211_s8 = sand.u32 (!%p206_p7), 1, %s1144_s13  }
  0x6f   : > { %209 = sbr.rel (%p206_p7) target bundleno = 234 (0xea), region = 28  ;;  %s212_s22 = scalar_lea.sflag (!%p206_p7), [#allocation3], %s211_s8 }
  0x70   : > { %s759_s18 = smul.u32 (!%p206_p7), 384, %s211_s8 }
  0x72   : > { %s1418_s21 = scalar_lea.vmem (!%p206_p7), [#allocation2], %s759_s18 }
  0x76   : > { %1115 = dma.done.wait (%p1298_p8), %s212_s22, 6144  }
  0x77   : > { %1117 = vsyncadd (%p1298_p8), %s212_s22, 4294961152  ;;  %s221_s27 = scalar_lea.sflag [#allocation6], %s211_s8  ;;  %s1424_s20 = scalar_lea.vmem [#allocation5], %s759_s18 }
  0x78   : > { %1119 = dma.done.wait (%p1298_p8), %s221_s27, 6144  }
  0x79   : > { %1121 = vsyncadd (%p1298_p8), %s221_s27, 4294961152  ;;  %s247_s19 = sand.u32 1, %s1132_s10   ;;  %s279_s5 = smul.u32 384, %s1152_s15  ;;  %v1216_v0 = vmov 0.0  }
  0x7a   : > { %s760_s24 = smul.u32 40, %s247_s19 }
  0x7b   : > { %s1436_s28 = sadd.s32 384, %s279_s5 }
  0x7c   : > { %s1438_s12 = scalar_lea.vmem [#allocation7], %s760_s24  ;;  %p732_p8 = scmp.gt.s32.totalorder %s1436_s28, 400 }
  0x7d   : > { %272 = vst [vmem:[%s1438_s12] sm:$0xff] %v1216_v0  ;;  %273 = vst [vmem:[%s1438_s12 + $0x8] sm:$0xff] %v1216_v0  ;;  %v1446_v1 = vmov (!%p732_p8), 0.0   ;;  %v1448_v2 = vmov (!%p732_p8), 0.0   ;;  %v1450_v3 = vmov (!%p732_p8), 0.0   ;;  %v1452_v4 = vmov (!%p732_p8), 0.0   ;;  %s1456_s25 = smov (!%p732_p8), 0  }
  0x7e   : > { %274 = vst [vmem:[%s1438_s12 + $0x10] sm:$0xff] %v1216_v0  ;;  %275 = vst [vmem:[%s1438_s12 + $0x18] sm:$0xff] %v1216_v0  ;;  %284 = sbr.rel (%p732_p8) target bundleno = 162 (0xa2), region = 44  ;;  %v1454_v5 = vmov (!%p732_p8), 0.0  }
  0x7f   : > { %276 = vst [vmem:[%s1438_s12 + $0x20] sm:$0xff] %v1216_v0 }
  0x85 LB: >> { %s733_s23 = sshll.u32 %s1184_s25, 6  ;;  %s290_s25 = sadd.s32 1, %s1184_s25   ;;  %s1184_s25 = sphi %s1456_s25, %s290_s25   ;;  %v1180_v5 = vphi %v1454_v5, %v1784_v5   ;;  %v1176_v4 = vphi %v1452_v4, %v1783_v4   ;;  %v1172_v3 = vphi %v1450_v3, %v1782_v3   ;;  %v1168_v2 = vphi %v1448_v2, %v1781_v2   ;;  %v1164_v1 = vphi %v1446_v1, %v1780_v1  }
  0x86   : >> { %s1478_s26 = scalar_lea.vmem %s1418_s21, %s733_s23 [#allocation2]  ;;  %s1481_s6 = scalar_lea.vmem %s1424_s20, %s733_s23 [#allocation5] }
  0x87   : >> { %v298_v6 = vld [vmem:[%s1478_s26] sm:$0xff]  ;;  %v299_v7 = vld [vmem:[%s1478_s26 + $0x8] sm:$0xff]  ;;  %v300_v8 = vld [vmem:[%s1478_s26 + $0x10] sm:$0xff]  ;;  %p287_p6 = scmp.ge.s32.totalorder %s290_s25, 6  }
  0x88   : >> { %v301_v9 = vld [vmem:[%s1478_s26 + $0x18] sm:$0xff]  ;;  %v315_v10 = vadd.f32 %v299_v7, %v298_v6  ;;  %v331_v11 = vmul.f32 %v298_v6, %v298_v6  ;;  %v332_v12 = vmul.f32 %v299_v7, %v299_v7  ;;  %v333_v13 = vmul.f32 %v300_v8, %v300_v8  ;;  %v302_v14 = vld [vmem:[%s1478_s26 + $0x20] sm:$0xff]  ;;  %v303_v15 = vld [vmem:[%s1478_s26 + $0x28] sm:$0xff] }
  0x89   : >> { %v307_v16 = vld [vmem:[%s1481_s6] sm:$0xff]  ;;  %v308_v17 = vld [vmem:[%s1481_s6 + $0x8] sm:$0xff]  ;;  %v309_v18 = vld [vmem:[%s1481_s6 + $0x10] sm:$0xff]  ;;  %v334_v21 = vmul.f32 %v301_v9, %v301_v9  ;;  %v335_v29 = vmul.f32 %v302_v14, %v302_v14  ;;  %v336_v33 = vmul.f32 %v303_v15, %v303_v15 }
  0x8a   : >> { %v310_v19 = vld [vmem:[%s1481_s6 + $0x18] sm:$0xff]  ;;  %v316_v20 = vadd.f32 %v315_v10, %v300_v8  ;;  %v339_v22 = vadd.f32 %v332_v12, %v331_v11  ;;  %v323_v23 = vadd.f32 %v308_v17, %v307_v16  ;;  %v347_v24 = vmul.f32 %v307_v16, %v307_v16  ;;  %v304_v26 = vld [vmem:[%s1478_s26 + $0x30] sm:$0xff]  ;;  %v311_v27 = vld [vmem:[%s1481_s6 + $0x20] sm:$0xff] }
  0x8b   : >> { %v348_v25 = vmul.f32 %v308_v17, %v308_v17  ;;  %v349_v31 = vmul.f32 %v309_v18, %v309_v18  ;;  %v350_v34 = vmul.f32 %v310_v19, %v310_v19  ;;  %v305_v35 = vld [vmem:[%s1478_s26 + $0x38] sm:$0xff]  ;;  %v312_v36 = vld [vmem:[%s1481_s6 + $0x28] sm:$0xff]  ;;  %v363_v40 = vmul.f32 %v307_v16, %v298_v6  ;;  %v313_v45 = vld [vmem:[%s1481_s6 + $0x30] sm:$0xff] }
  0x8c   : >> { %v317_v28 = vadd.f32 %v316_v20, %v301_v9  ;;  %v340_v30 = vadd.f32 %v339_v22, %v333_v13  ;;  %v324_v32 = vadd.f32 %v323_v23, %v309_v18  ;;  %v337_v42 = vmul.f32 %v304_v26, %v304_v26  ;;  %v314_v54 = vld [vmem:[%s1481_s6 + $0x38] sm:$0xff] }
  0x8d   : >> { %v355_v39 = vadd.f32 %v348_v25, %v347_v24  ;;  %v351_v43 = vmul.f32 %v311_v27, %v311_v27  ;;  %v364_v44 = vmul.f32 %v308_v17, %v299_v7  ;;  %v365_v49 = vmul.f32 %v309_v18, %v300_v8 }
  0x8e   : >> { %v318_v37 = vadd.f32 %v317_v28, %v302_v14  ;;  %v341_v38 = vadd.f32 %v340_v30, %v334_v21  ;;  %v325_v41 = vadd.f32 %v324_v32, %v310_v19  ;;  %v338_v51 = vmul.f32 %v305_v35, %v305_v35  ;;  %v736_v28 = vld [vmem:[%s1438_s12 + $0x10] sm:$0xff] (%p287_p6)  ;;  %v738_v32 = vld [vmem:[%s1438_s12 + $0x18] sm:$0xff] (%p287_p6) }
  0x8f   : >> { %v356_v48 = vadd.f32 %v355_v39, %v349_v31  ;;  %v352_v52 = vmul.f32 %v312_v36, %v312_v36  ;;  %v366_v53 = vmul.f32 %v310_v19, %v301_v9  ;;  %v371_v58 = vadd.f32 %v364_v44, %v363_v40 }
  0x90   : >> { %v319_v46 = vadd.f32 %v318_v37, %v303_v15  ;;  %v342_v47 = vadd.f32 %v341_v38, %v335_v29  ;;  %v326_v50 = vadd.f32 %v325_v41, %v311_v27  ;;  %v353_v60 = vmul.f32 %v313_v45, %v313_v45 }
  0x91   : >> { %v357_v57 = vadd.f32 %v356_v48, %v350_v34  ;;  %v367_v61 = vmul.f32 %v311_v27, %v302_v14  ;;  %v372_v6 = vadd.f32 %v371_v58, %v365_v49  ;;  %v354_v10 = vmul.f32 %v314_v54, %v314_v54 }
  0x92   : >> { %v320_v55 = vadd.f32 %v319_v46, %v304_v26  ;;  %v343_v56 = vadd.f32 %v342_v47, %v336_v33  ;;  %v327_v59 = vadd.f32 %v326_v50, %v312_v36  ;;  %v368_v11 = vmul.f32 %v312_v36, %v303_v15  ;;  %v740_v33 = vld [vmem:[%s1438_s12 + $0x20] sm:$0xff] (%p287_p6) }
  0x93   : >> { %v358_v0 = vadd.f32 %v357_v57, %v351_v43  ;;  %v373_v9 = vadd.f32 %v372_v6, %v366_v53  ;;  %v369_v19 = vmul.f32 %v313_v45, %v304_v26  ;;  %v370_v22 = vmul.f32 %v314_v54, %v305_v35  ;;  %v734_v26 = vld [vmem:[%s1438_s12 + $0x8] sm:$0xff] (%p287_p6) }
  0x94   : >> { %v321_v62 = vadd.f32 %v320_v55, %v305_v35  ;;  %v344_v63 = vadd.f32 %v343_v56, %v337_v42  ;;  %v328_v7 = vadd.f32 %v327_v59, %v313_v45 }
  0x95   : >> { %v359_v13 = vadd.f32 %v358_v0, %v352_v52  ;;  %v374_v20 = vadd.f32 %v373_v9, %v367_v61 }
  0x96   : >> { %v322_v8 = vadd.f32 %v1180_v5, %v321_v62   ;;  %v345_v12 = vadd.f32 %v344_v63, %v338_v51  ;;  %v329_v16 = vadd.f32 %v328_v7, %v314_v54 }
  0x97   : >> { %v360_v18 = vadd.f32 %v359_v13, %v353_v60  ;;  %v375_v23 = vadd.f32 %v374_v20, %v368_v11 }
  0x98   : >> { %v346_v17 = vadd.f32 %v1172_v3, %v345_v12   ;;  %v330_v14 = vadd.f32 %v1176_v4, %v329_v16   ;;  %v1784_v5 = vmov %v322_v8 }
  0x99   : >> { %v361_v21 = vadd.f32 %v360_v18, %v354_v10  ;;  %v376_v25 = vadd.f32 %v375_v23, %v369_v19  ;;  %289 = sbr.rel (!%p287_p6) target bundleno = 133 (0x85), region = 124  ;;  %v379_v5 = vld [vmem:[%s1438_s12] sm:$0xff] (%p287_p6) }
  0x9a   : >> { %v1782_v3 = vmov %v346_v17  ;;  %v1783_v4 = vmov %v330_v14  ;;  %v380_v29 = vadd.f32 (%p287_p6), %v379_v5, %v322_v8  ;;  %v384_v30 = vadd.f32 (%p287_p6), %v734_v26, %v330_v14 }
  0x9b   : >> { %v362_v24 = vadd.f32 %v1168_v2, %v361_v21   ;;  %v377_v15 = vadd.f32 %v376_v25, %v370_v22  ;;  %v388_v31 = vadd.f32 (%p287_p6), %v736_v28, %v346_v17 }
  0x9c   : > { %381 = vst [vmem:[%s1438_s12] sm:$0xff] (%p287_p6), %v380_v29  ;;  %735 = vst [vmem:[%s1438_s12 + $0x8] sm:$0xff] (%p287_p6), %v384_v30 }
  0x9d   : >> { %v378_v27 = vadd.f32 %v1164_v1, %v377_v15   ;;  %v1781_v2 = vmov %v362_v24  ;;  %v392_v34 = vadd.f32 (%p287_p6), %v738_v32, %v362_v24  ;;  %737 = vst [vmem:[%s1438_s12 + $0x10] sm:$0xff] (%p287_p6), %v388_v31 }
  0x9f   : >> { %v1780_v1 = vmov %v378_v27  ;;  %v396_v35 = vadd.f32 (%p287_p6), %v740_v33, %v378_v27  ;;  %739 = vst [vmem:[%s1438_s12 + $0x18] sm:$0xff] (%p287_p6), %v392_v34 }
  0xa1   : > { %741 = vst [vmem:[%s1438_s12 + $0x20] sm:$0xff] %v396_v35 }
  0xa2 PF: > { %p742_p9 = scmp.le.s32.totalorder %s1436_s28, 400 }
  0xa3   : > { %v402_v1 = vlaneseq (!%p742_p9)  ;;  %v1551_v41 = vmov (!%p742_p9), 0.0   ;;  %v1553_v42 = vmov (!%p742_p9), 0.0   ;;  %v1555_v43 = vmov (!%p742_p9), 0.0   ;;  %s1561_s7 = smov (!%p742_p9), 0  }
  0xa4   : > { %401 = sbr.rel (%p742_p9) target bundleno = 208 (0xd0), region = 55  ;;  %v1557_v44 = vmov (!%p742_p9), 0.0   ;;  %v1559_v45 = vmov (!%p742_p9), 0.0  }
  0xa5   : > { %v1528_v2 = vshrl.u32 (!%p742_p9), %v402_v1, 7 }
  0xa7   : > { %v1531_v3 = vadd.s32 (!%p742_p9), 8, %v1528_v2  ;;  %v1534_v4 = vadd.s32 (!%p742_p9), 16, %v1528_v2  ;;  %v1537_v36 = vadd.s32 (!%p742_p9), 24, %v1528_v2  ;;  %v1540_v37 = vadd.s32 (!%p742_p9), 32, %v1528_v2 }
  0xa8   : > { %v1543_v38 = vadd.s32 (!%p742_p9), 40, %v1528_v2  ;;  %v1546_v39 = vadd.s32 (!%p742_p9), 48, %v1528_v2  ;;  %v1549_v40 = vadd.s32 (!%p742_p9), 56, %v1528_v2 }
  0xab LB: >> { %s441_s8 = ssub.s32 400, %s279_s5  ;;  %s743_s18 = sshll.u32 %s1208_s7, 6  ;;  %s1208_s7 = sphi %s1561_s7, %s416_s7   ;;  %v1204_v45 = vphi %v1559_v45, %v1789_v45   ;;  %v1200_v44 = vphi %v1557_v44, %v1788_v44   ;;  %v1196_v43 = vphi %v1555_v43, %v1787_v43   ;;  %v1192_v42 = vphi %v1553_v42, %v1786_v42   ;;  %v1188_v41 = vphi %v1551_v41, %v1785_v41  }
  0xac   : >> { %s423_s22 = scalar_lea.vmem %s1418_s21, %s743_s18 [#allocation2]  ;;  %s442_s27 = ssub.s32 %s441_s8, %s743_s18 }
  0xad   : >> { %s1586_s24 = scalar_lea.vmem %s1424_s20, %s743_s18 [#allocation5]  ;;  %v1588_v46 = vstv %s442_s27  ;;  %v424_v47 = vld [vmem:[%s423_s22] sm:$0xff]  ;;  %v425_v48 = vld [vmem:[%s423_s22 + $0x8] sm:$0xff]  ;;  %v426_v49 = vld [vmem:[%s423_s22 + $0x10] sm:$0xff]  ;;  %s416_s7 = sadd.s32 1, %s1208_s7  }
  0xae   : >> { %vm444_vm0 = vcmp.lt.s32.totalorder %v1528_v2, %v1588_v46  ;;  %v427_v50 = vld [vmem:[%s423_s22 + $0x18] sm:$0xff]  ;;  %vm445_vm1 = vcmp.lt.s32.totalorder %v1531_v3, %v1588_v46  ;;  %vm446_vm2 = vcmp.lt.s32.totalorder %v1534_v4, %v1588_v46  ;;  %v428_v51 = vld [vmem:[%s423_s22 + $0x20] sm:$0xff]  ;;  %v434_v53 = vld [vmem:[%s1586_s24 + $0x8] sm:$0xff]  ;;  %vm447_vm3 = vcmp.lt.s32.totalorder %v1537_v36, %v1588_v46  ;;  %p413_p11 = scmp.ge.s32.totalorder %s416_s7, 6  }
  0xaf   : >> { %v433_v52 = vld [vmem:[%s1586_s24] sm:$0xff]  ;;  %vm448_vm4 = vcmp.lt.s32.totalorder %v1540_v37, %v1588_v46  ;;  %v429_v54 = vld [vmem:[%s423_s22 + $0x28] sm:$0xff]  ;;  %vm449_vm5 = vcmp.lt.s32.totalorder %v1543_v38, %v1588_v46  ;;  %v452_v55 = vsel %vm444_vm0, %v424_v47, 0.0  ;;  %v430_v56 = vld [vmem:[%s423_s22 + $0x30] sm:$0xff]  ;;  %vm450_vm6 = vcmp.lt.s32.totalorder %v1546_v39, %v1588_v46 }
  0xb0   : >> { %v435_v57 = vld [vmem:[%s1586_s24 + $0x10] sm:$0xff]  ;;  %vm451_vm7 = vcmp.lt.s32.totalorder %v1549_v40, %v1588_v46  ;;  %v453_v58 = vsel %vm445_vm1, %v425_v48, 0.0  ;;  %v454_v59 = vsel %vm446_vm2, %v426_v49, 0.0  ;;  %v431_v60 = vld [vmem:[%s423_s22 + $0x38] sm:$0xff]  ;;  %v455_v62 = vsel %vm447_vm3, %v427_v50, 0.0  ;;  %v437_v12 = vld [vmem:[%s1586_s24 + $0x20] sm:$0xff] }
  0xb1   : >> { %v436_v61 = vld [vmem:[%s1586_s24 + $0x18] sm:$0xff]  ;;  %v456_v63 = vsel %vm448_vm4, %v428_v51, 0.0  ;;  %v460_v0 = vsel %vm444_vm0, %v433_v52, 0.0  ;;  %v461_v6 = vsel %vm445_vm1, %v434_v53, 0.0  ;;  %v1634_v7 = vsel %vm449_vm5, %v429_v54, 0.0  ;;  %v438_v18 = vld [vmem:[%s1586_s24 + $0x28] sm:$0xff] }
  0xb2   : >> { %v468_v10 = vadd.f32 %v453_v58, %v452_v55  ;;  %v476_v11 = vadd.f32 %v461_v6, %v460_v0  ;;  %v484_v8 = vmul.f32 %v452_v55, %v452_v55  ;;  %v1640_v13 = vsel %vm450_vm6, %v430_v56, 0.0  ;;  %v439_v19 = vld [vmem:[%s1586_s24 + $0x30] sm:$0xff]  ;;  %v440_v33 = vld [vmem:[%s1586_s24 + $0x38] sm:$0xff] }
  0xb3   : >> { %v462_v9 = vsel %vm446_vm2, %v435_v57, 0.0  ;;  %v485_v16 = vmul.f32 %v453_v58, %v453_v58  ;;  %v486_v17 = vmul.f32 %v454_v59, %v454_v59  ;;  %v459_v20 = vsel %vm451_vm7, %v431_v60, 0.0 }
  0xb4   : >> { %v463_v14 = vsel %vm447_vm3, %v436_v61, 0.0  ;;  %v469_v21 = vadd.f32 %v468_v10, %v454_v59  ;;  %v477_v22 = vadd.f32 %v476_v11, %v462_v9  ;;  %v487_v23 = vmul.f32 %v455_v62, %v455_v62 }
  0xb5   : >> { %v492_v24 = vadd.f32 %v485_v16, %v484_v8  ;;  %v500_v25 = vmul.f32 %v460_v0, %v460_v0  ;;  %v501_v15 = vmul.f32 %v461_v6, %v461_v6  ;;  %v464_v27 = vsel %vm448_vm4, %v437_v12, 0.0 }
  0xb6   : >> { %v470_v5 = vadd.f32 %v469_v21, %v455_v62  ;;  %v478_v26 = vadd.f32 %v477_v22, %v463_v14  ;;  %v502_v28 = vmul.f32 %v462_v9, %v462_v9  ;;  %v465_v29 = vsel %vm449_vm5, %v438_v18, 0.0 }
  0xb7   : >> { %v466_v30 = vsel %vm450_vm6, %v439_v19, 0.0  ;;  %v488_v31 = vmul.f32 %v456_v63, %v456_v63  ;;  %v493_v32 = vadd.f32 %v492_v24, %v486_v17  ;;  %v503_v1 = vmul.f32 %v463_v14, %v463_v14 }
  0xb8   : >> { %v471_v34 = vadd.f32 %v470_v5, %v456_v63  ;;  %v479_v35 = vadd.f32 %v478_v26, %v464_v27  ;;  %v508_v47 = vadd.f32 %v501_v15, %v500_v25  ;;  %v489_v48 = vmul.f32 %v1634_v7, %v1634_v7 }
  0xb9   : >> { %v494_v49 = vadd.f32 %v493_v32, %v487_v23  ;;  %v516_v50 = vmul.f32 %v460_v0, %v452_v55  ;;  %v517_v51 = vmul.f32 %v461_v6, %v453_v58  ;;  %v504_v54 = vmul.f32 %v464_v27, %v464_v27 }
  0xba   : >> { %v472_v52 = vadd.f32 %v471_v34, %v1634_v7  ;;  %v480_v53 = vadd.f32 %v479_v35, %v465_v29  ;;  %v509_v56 = vadd.f32 %v508_v47, %v502_v28  ;;  %v467_v57 = vsel %vm451_vm7, %v440_v33, 0.0  ;;  %v748_v47 = vld [vmem:[%s1438_s12 + $0x18] sm:$0xff] (%p413_p11) }
  0xbb   : >> { %v490_v60 = vmul.f32 %v1640_v13, %v1640_v13  ;;  %v495_v61 = vadd.f32 %v494_v49, %v488_v31  ;;  %v518_v10 = vmul.f32 %v462_v9, %v454_v59  ;;  %v505_v12 = vmul.f32 %v465_v29, %v465_v29 }
  0xbc   : >> { %v473_v11 = vadd.f32 %v472_v52, %v1640_v13  ;;  %v481_v8 = vadd.f32 %v480_v53, %v466_v30  ;;  %v510_v55 = vadd.f32 %v509_v56, %v503_v1  ;;  %v491_v58 = vmul.f32 %v459_v20, %v459_v20 }
  0xbd   : >> { %v496_v0 = vadd.f32 %v495_v61, %v489_v48  ;;  %v519_v6 = vmul.f32 %v463_v14, %v455_v62  ;;  %v524_v16 = vadd.f32 %v517_v51, %v516_v50  ;;  %v506_v19 = vmul.f32 %v466_v30, %v466_v30  ;;  %v750_v48 = vld [vmem:[%s1438_s12 + $0x20] sm:$0xff] (%p413_p11) }
  0xbe   : >> { %v474_v17 = vadd.f32 %v473_v11, %v459_v20  ;;  %v482_v18 = vadd.f32 %v481_v8, %v467_v57  ;;  %v511_v21 = vadd.f32 %v510_v55, %v504_v54  ;;  %v520_v22 = vmul.f32 %v464_v27, %v456_v63 }
  0xbf   : >> { %v497_v46 = vadd.f32 %v496_v0, %v490_v60  ;;  %v525_v23 = vadd.f32 %v524_v16, %v518_v10  ;;  %v507_v9 = vmul.f32 %v467_v57, %v467_v57  ;;  %v521_v5 = vmul.f32 %v465_v29, %v1634_v7  ;;  %v532_v7 = vld [vmem:[%s1438_s12] sm:$0xff] (%p413_p11) }
  0xc0   : >> { %v475_v24 = vadd.f32 %v1204_v45, %v474_v17   ;;  %v483_v59 = vadd.f32 %v1200_v44, %v482_v18   ;;  %v512_v25 = vadd.f32 %v511_v21, %v505_v12  ;;  %v522_v14 = vmul.f32 %v466_v30, %v1640_v13  ;;  %v744_v13 = vld [vmem:[%s1438_s12 + $0x8] sm:$0xff] (%p413_p11) }
  0xc1   : >> { %v498_v15 = vadd.f32 %v497_v46, %v491_v58  ;;  %v526_v26 = vadd.f32 %v525_v23, %v519_v6  ;;  %v523_v33 = vmul.f32 %v467_v57, %v459_v20  ;;  %v746_v20 = vld [vmem:[%s1438_s12 + $0x10] sm:$0xff] (%p413_p11) }
  0xc2   : >> { %v513_v28 = vadd.f32 %v512_v25, %v506_v19  ;;  %v1788_v44 = vmov %v483_v59  ;;  %v533_v29 = vadd.f32 (%p413_p11), %v532_v7, %v475_v24  ;;  %v537_v30 = vadd.f32 (%p413_p11), %v744_v13, %v483_v59 }
  0xc3   : >> { %v499_v62 = vadd.f32 %v1196_v43, %v498_v15   ;;  %v527_v31 = vadd.f32 %v526_v26, %v520_v22 }
  0xc4   : >> { %v514_v32 = vadd.f32 %v513_v28, %v507_v9  ;;  %534 = vst [vmem:[%s1438_s12] sm:$0xff] (%p413_p11), %v533_v29  ;;  %745 = vst [vmem:[%s1438_s12 + $0x8] sm:$0xff] (%p413_p11), %v537_v30 }
  0xc5   : >> { %v528_v63 = vadd.f32 %v527_v31, %v521_v5  ;;  %v1787_v43 = vmov %v499_v62  ;;  %v541_v1 = vadd.f32 (%p413_p11), %v746_v20, %v499_v62 }
  0xc6   : >> { %v515_v27 = vadd.f32 %v1192_v42, %v514_v32  }
  0xc7   : >> { %v529_v45 = vadd.f32 %v528_v63, %v522_v14  ;;  %415 = sbr.rel (!%p413_p11) target bundleno = 171 (0xab), region = 135  ;;  %747 = vst [vmem:[%s1438_s12 + $0x10] sm:$0xff] (%p413_p11), %v541_v1 }
  0xc8   : >> { %v1786_v42 = vmov %v515_v27  ;;  %v545_v49 = vadd.f32 (%p413_p11), %v748_v47, %v515_v27 }
  0xc9   : >> { %v530_v34 = vadd.f32 %v529_v45, %v523_v33  ;;  %v1789_v45 = vmov %v475_v24 }
  0xca   : > { %749 = vst [vmem:[%s1438_s12 + $0x18] sm:$0xff] (%p413_p11), %v545_v49 }
  0xcb   : >> { %v531_v35 = vadd.f32 %v1188_v41, %v530_v34  }
  0xcd   : >> { %v1785_v41 = vmov %v531_v35  ;;  %v549_v50 = vadd.f32 (%p413_p11), %v750_v48, %v531_v35 }
  0xcf   : > { %751 = vst [vmem:[%s1438_s12 + $0x20] sm:$0xff] %v549_v50 }
  0xd0 PF: > { %s761_s21 = smul.u32 640, %s1152_s15  ;;  %s565_s20 = sshll.u32 %s1438_s12, 4  ;;  %s1709_s20 = int_to_ptr.vmem [resolvable:$true] %s565_s20 }
  0xd1   : > { %s1713_s23 = scalar_lea.sflag [#allocation4], %s247_s19  ;;  %s1002_s26 = scalar_lea.vmem %s1709_s20, 640 }
  0xd2   : > { %s1707_s25 = scalar_lea.hbm %s1771_s2, %s761_s21  ;;  %p1003_p12 = scmp.ne.s32.totalorder %s1709_s20, %s1002_s26 }
  0xd3   : > { %p1790_p13 = scmp.ne.s32.totalorder %s1778_s3, 0  ;;  %s1217_s15 = smov [#allocation7]  }
  0xd4   : > { %s1006_s12 = sshll.u32 %s1217_s15, 4  ;;  %s1007_s12 = int_to_ptr.vmem [resolvable:$false] %s1006_s12 }
  0xd5   : > { %p1004_p1 = pnand %p1003_p12, %p1790_p13  ;;  %s1008_s6 = scalar_lea.vmem %s1007_s12, 1280 }
  0xd6   : > { %p1009_p3 = scmp.lt.s32.totalorder %s1709_s20, %s1007_s12  ;;  %p1010_p10 = scmp.lt.s32.totalorder %s1008_s6, %s1002_s26 }
  0xd7   : > { %p1005_p2 = pneg %p1004_p1 }
  0xd8   : > { %p1011_p0 = por %p1010_p10, %p1009_p3 }
  0xda   : > { %p1012_p5 = pnand %p1011_p0, %p1005_p2 }
  0xdc   : > { %1015 = shalt.err (!%p1012_p5)
}
  0xdd   : > { %s1016_s19 = scalar_lea.hbm %s1707_s25, 640  ;;  %s1020_s18 = scalar_lea.hbm %s1771_s2, 1280 }
  0xde   : > { %p1017_p4 = scmp.ne.s32.totalorder %s1707_s25, %s1016_s19  ;;  %p1021_p6 = scmp.lt.u32.totalorder %s1707_s25, %s1771_s2 }
  0xdf   : > { %p1022_p9 = scmp.lt.u32.totalorder %s1020_s18, %s1016_s19  ;;  %p1024_p12 = scmp.lt.u32.totalorder %s1016_s19, %s1707_s25 }
  0xe0   : > { %p1018_p7 = pnand %p1017_p4, %p1790_p13 }
  0xe1   : > { %p1023_p11 = por %p1022_p9, %p1021_p6 }
  0xe2   : > { %p1019_p8 = pneg %p1018_p7 }
  0xe3   : > { %p1025_p1 = por %p1024_p12, %p1023_p11 }
  0xe5   : > { %p1026_p2 = pnand %p1025_p1, %p1019_p8 }
  0xe7   : > { %1029 = shalt.err (!%p1026_p2)
}
  0xe8   : > { %s1218_s24 = smov 128   ;;  %s1219_s21 = smov 8  }
  0xe9   : > { %764 = dma.vmem_to_hbm [thread:$0]  (%p1790_p13), %s1709_s20, 640, %s1707_s25, %s1713_s23, %s1218_s24, %s1218_s24, %s1219_s21  }
  0xea PF: > { %s580_s5 = sand.u32 1, %s1128_s9   ;;  %p1791_p3 = scmp.ne.s32.totalorder %s1779_s4, 0 }
  0xeb   : > { %p1792_p10 = scmp.ge.s32.totalorder %s1160_s17, 2  ;;  %s581_s28 = scalar_lea.sflag [#allocation4], %s580_s5 }
  0xed   : > { %p767_p0 = pnand %p1792_p10, %p1791_p3 }
  0xef   : > { %1123 = dma.done.wait (!%p767_p0), %s581_s28, 640  }
  0xf0   : > { %1125 = vsyncadd (!%p767_p0), %s581_s28, 4294966656  ;;  %s21_s17 = sadd.s32 1, %s1160_s17   ;;  %s1793_s3 = sld [smem:[#allocation11_spill]] }
  0xf1   : > { %p18_p5 = scmp.ge.s32.totalorder %s21_s17, 4   ;;  %s1794_s9 = smov %s1132_s10 }
  0xf2   : > { %s1795_s10 = smov %s1136_s11  ;;  %s1796_s11 = smov %s1307_s29 }
  0xf3   : > { %s1797_s12 = smov %s1144_s13  ;;  %s1798_s13 = smov %s1148_s14 }
  0xf4   : > { %s1799_s14 = smov %s1310_s30  ;;  %s1800_s15 = smov %s1156_s16 }
  0xf5   :  { %20 = sbr.rel (!%p18_p5) target bundleno = 10 (0xa), region = 146 }
  0xf6   : > { %s1801_s16 = smov %s1793_s3 }
  0xfc   :  { %586 = vsyncpa [#allocation3], 1 }
  0xfd   :  { %588 = vsyncpa [#allocation3 + $0x1], 1 }
  0xfe   :  { %589 = vsyncpa [#allocation6], 1 }
  0xff   :  { %591 = vsyncpa [#allocation6 + $0x1], 1 }
 0x100   :  { %592 = vsyncpa [#allocation4], 1 }
 0x101   :  { %594 = vsyncpa [#allocation4 + $0x1], 1 }

</bundles_post_ra>
